<compile_context>
chip_gen: v5e
topology: v5e:2x2
jax: 0.10.0
libtpu: 0.0.40
codegen_flags: <defaults>
</compile_context>

<pallas_src>
import functools
import math

import jax
import jax.numpy as jnp
from jax.experimental import pallas as pl
from jax.experimental.pallas import tpu as pltpu


def _round_up(x, m):
    return (x + m - 1) // m * m


def _ffn_kernel(x_ref, w1_ref, b1_ref, w2_ref, b2_ref, o_ref, acc_ref, *,
                scale, act):
    # x_ref : (tn, K1p)  bf16    w1_ref: (K1p, tf) bf16   b1_ref: (1, tf) f32
    # w2_ref: (tf, Hp)   bf16    b2_ref: (1, Hp)  f32
    # o_ref : (tn, Hp)   out dtype        acc_ref: (tn, Hp) f32 scratch
    f = pl.program_id(1)

    @pl.when(f == 0)
    def _init():
        acc_ref[...] = jnp.zeros_like(acc_ref)

    # ffn_1 (Conv1d folded to a matmul): bf16 MXU inputs, f32 accumulation.
    h = jnp.dot(x_ref[...], w1_ref[...], preferred_element_type=jnp.float32)
    h = (h + b1_ref[...]) * jnp.float32(scale)

    if act == "gelu":
        # TODO(synk): PyTorch F.gelu defaults to the exact erf form; erf has no
        # Mosaic lowering, so the tanh approximation is used (<~3e-4 abs diff).
        c = jnp.float32(0.7978845608028654)  # sqrt(2/pi)
        h = 0.5 * h * (1.0 + jnp.tanh(c * (h + 0.044715 * h * h * h)))
    elif act == "relu":
        h = jnp.maximum(h, jnp.float32(0.0))
    elif act == "swish":
        h = h * jax.nn.sigmoid(h)
    else:
        raise ValueError(f"unsupported act: {act}")

    # TODO(synk): dropout with p>0 in training mode is not implemented
    # (module default dropout=0.0 is an identity).

    # ffn_2 (Linear): partial product for this F tile, accumulated in f32.
    acc_ref[...] += jnp.dot(h.astype(jnp.bfloat16), w2_ref[...],
                            preferred_element_type=jnp.float32)

    @pl.when(f == pl.num_programs(1) - 1)
    def _finalize():
        o_ref[...] = (acc_ref[...] + b2_ref[...]).astype(o_ref.dtype)


def transformer_ffn_layer(x, conv_w, conv_b, lin_w, lin_b, *,
                          kernel_size=1, padding="SAME", act="gelu",
                          tile_n=512, tile_f=2048):
    """TransformerFFNLayer forward.

    x:      [T, B, hidden]
    conv_w: [filter, hidden, kernel_size]   (nn.Conv1d weight)
    conv_b: [filter]                        (nn.Conv1d bias)
    lin_w:  [hidden, filter]                (nn.Linear weight)
    lin_b:  [hidden]                        (nn.Linear bias)
    returns [T, B, hidden]
    """
    T, B, H = x.shape
    Fi, Hc, K = conv_w.shape
    assert Hc == H and K == kernel_size

    # ---- fold the Conv1d into one [N, k*H] @ [k*H, F] matmul (im2col) ----
    if kernel_size == 1:
        x2 = x.reshape(T * B, H)
        w1 = conv_w[:, :, 0].T                        # [H, F]
    else:
        # TODO(synk): wrapper-side im2col materializes a k-times-larger input in
        # HBM; an in-kernel halo'd per-tap accumulation would avoid that traffic.
        if padding == "SAME":
            assert kernel_size % 2 == 1, "SAME padding needs odd kernel_size"
            pad_l = pad_r = kernel_size // 2
        elif padding == "LEFT":
            pad_l, pad_r = kernel_size - 1, 0
        else:
            raise ValueError(f"unsupported padding: {padding}")
        xp = jnp.pad(x, ((pad_l, pad_r), (0, 0), (0, 0)))
        taps = [xp[j:j + T] for j in range(kernel_size)]          # each [T,B,H]
        x2 = jnp.concatenate(taps, axis=-1).reshape(T * B, kernel_size * H)
        # flat feature index j*H + c  <->  conv_w[f, c, j]
        w1 = conv_w.transpose(2, 1, 0).reshape(kernel_size * H, Fi)

    N, K1 = x2.shape
    scale = float(kernel_size) ** (-0.5)
    out_dtype = x.dtype
    out_itemsize = jnp.dtype(out_dtype).itemsize

    # ---- 128-lane-aligned feature dims (unmasked stores, full MXU columns) ----
    K1p = _round_up(K1, 128)
    Hp = _round_up(H, 128)
    Fp = _round_up(Fi, 128)

    # ---- F (filter) tiling: decouple VMEM from filter_size ----
    # keep each double-buffered w1 tile under ~8 MiB of bf16
    max_tf = max(128, ((8 << 20) // (4 * K1p)) // 128 * 128)
    tf = max(128, min(int(tile_f), max_tf) // 128 * 128)
    if Fp <= tf:
        tf = Fp
    else:
        Fp = _round_up(Fp, tf)
    n_f_steps = Fp // tf

    # ---- row tiling: >=2 row steps when possible (v7x has 2 TensorCores);
    #      tn multiple of 16 for bf16 sublane packing ----
    tn = min(int(tile_n), _round_up(-(-N // 2), 16))
    tn = max(16, _round_up(tn, 16))
    n_pad = _round_up(N, tn)
    n_row_tiles = n_pad // tn

    # ---- bf16 MXU operands; biases stay f32 (added on the f32 tile) ----
    x2p = jnp.pad(x2, ((0, n_pad - N), (0, K1p - K1))).astype(jnp.bfloat16)
    w1p = jnp.pad(w1, ((0, K1p - K1), (0, Fp - Fi))).astype(jnp.bfloat16)
    b1p = jnp.pad(conv_b, (0, Fp - Fi)).astype(jnp.float32).reshape(1, Fp)
    w2p = jnp.pad(lin_w.T, ((0, Fp - Fi), (0, Hp - H))).astype(jnp.bfloat16)
    b2p = jnp.pad(lin_b, (0, Hp - H)).astype(jnp.float32).reshape(1, Hp)

    # Single F step -> weights are fully resident, don't double-buffer them.
    w_mode = pl.Buffered(1) if n_f_steps == 1 else pl.Buffered(2)

    # ---- explicit VMEM budget from actual tile sizes (v5e default is 16 MiB;
    #      margin covers compiler-internal scratch; stays <64 MiB on v7x for
    #      the default tn/tf) ----
    w_bufs = 1 if n_f_steps == 1 else 2
    vmem_need = (2 * tn * K1p * 2                                   # x  (bf16, 2 bufs)
                 + w_bufs * (K1p * tf * 2 + tf * 4 + tf * Hp * 2)   # w1, b1, w2
                 + Hp * 4                                           # b2 (1 buf)
                 + 2 * tn * Hp * out_itemsize                       # out (2 bufs)
                 + tn * Hp * 4)                                     # acc scratch
    vmem_limit = int(min(vmem_need + (24 << 20), 96 << 20))

    w_refetch = 1 if n_f_steps == 1 else n_row_tiles
    cost = pl.CostEstimate(
        flops=int(2 * n_pad * (K1p * Fp + Fp * Hp)),
        transcendentals=int(n_pad * Fp),
        bytes_accessed=int(x2p.size * 2 + n_pad * Hp * out_itemsize
                           + (w1p.size * 2 + w2p.size * 2 + b1p.size * 4) * w_refetch
                           + b2p.size * 4),
    )

    out2 = pl.pallas_call(
        functools.partial(_ffn_kernel, scale=scale, act=act),
        out_shape=jax.ShapeDtypeStruct((n_pad, Hp), out_dtype),
        grid_spec=pltpu.PrefetchScalarGridSpec(
            num_scalar_prefetch=0,
            grid=(n_row_tiles, n_f_steps),
            in_specs=[
                pl.BlockSpec((tn, K1p), lambda i, f: (i, 0)),       # streamed rows
                pl.BlockSpec((K1p, tf), lambda i, f: (0, f), pipeline_mode=w_mode),
                pl.BlockSpec((1, tf), lambda i, f: (0, f), pipeline_mode=w_mode),
                pl.BlockSpec((tf, Hp), lambda i, f: (f, 0), pipeline_mode=w_mode),
                pl.BlockSpec((1, Hp), lambda i, f: (0, 0),
                             pipeline_mode=pl.Buffered(1)),
            ],
            out_specs=pl.BlockSpec((tn, Hp), lambda i, f: (i, 0)),
            scratch_shapes=[pltpu.VMEM((tn, Hp), jnp.float32)],
        ),
        compiler_params=pltpu.CompilerParams(
            dimension_semantics=("parallel", "arbitrary"),
            vmem_limit_bytes=vmem_limit,
        ),
        cost_estimate=cost,
    )(x2p, w1p, b1p, w2p, b2p)

    return out2[:N, :H].reshape(T, B, H)


def _reference_ffn(x, conv_w, conv_b, lin_w, lin_b, *,
                   kernel_size=1, padding="SAME"):
    """Pure-JAX reference mirroring the PyTorch module (act='gelu', p=0), using
    the same bf16-operand / f32-accumulation matmul precision as the kernel."""
    T, B, H = x.shape
    Fi = conv_w.shape[0]
    if padding == "SAME":
        pad_l = pad_r = kernel_size // 2
    else:  # 'LEFT'
        pad_l, pad_r = kernel_size - 1, 0
    xp = jnp.pad(x, ((pad_l, pad_r), (0, 0), (0, 0))).astype(jnp.bfloat16)
    h = jnp.broadcast_to(conv_b.astype(jnp.float32), (T, B, Fi))
    for j in range(kernel_size):
        h = h + jnp.einsum("tbc,fc->tbf", xp[j:j + T],
                           conv_w[:, :, j].astype(jnp.bfloat16),
                           preferred_element_type=jnp.float32)
    h = h * (float(kernel_size) ** (-0.5))
    h = jax.nn.gelu(h, approximate=True)   # same tanh form as the kernel
    y = jnp.einsum("tbf,hf->tbh", h.astype(jnp.bfloat16),
                   lin_w.astype(jnp.bfloat16),
                   preferred_element_type=jnp.float32)
    y = y + lin_b.astype(jnp.float32)
    return y.astype(x.dtype)


if __name__ == "__main__":
    T, B, H, Fi = 8, 2, 32, 64   # seq=8, batch=2, hidden=32, filter=64

    key = jax.random.PRNGKey(0)
    k_x, k_w1, k_b1, k_w2, k_w3 = jax.random.split(key, 5)

    x = jax.random.normal(k_x, (T, B, H), dtype=jnp.float32)

    # Conv1d(hidden, filter, k=1) params; Linear(filter, hidden) with
    # xavier_uniform weight and zero bias, matching the module's Linear().
    bound1 = math.sqrt(6.0 / (H + Fi))
    conv_w = jax.random.uniform(k_w1, (Fi, H, 1), jnp.float32, -bound1, bound1)
    conv_b = jax.random.uniform(k_b1, (Fi,), jnp.float32, -0.1, 0.1)
    bound2 = math.sqrt(6.0 / (Fi + H))
    lin_w = jax.random.uniform(k_w2, (H, Fi), jnp.float32, -bound2, bound2)
    lin_b = jnp.zeros((H,), jnp.float32)

    # Default config: kernel_size=1, padding='SAME', act='gelu', dropout=0.0.
    out = transformer_ffn_layer(x, conv_w, conv_b, lin_w, lin_b,
                                kernel_size=1, padding="SAME", act="gelu")
    out = jax.block_until_ready(out)
    ref = _reference_ffn(x, conv_w, conv_b, lin_w, lin_b, kernel_size=1)
    assert out.shape == (T, B, H)
    assert jnp.allclose(out, ref, atol=2e-3, rtol=2e-3), "mismatch (k=1)"

    # Also exercise the k>1 'SAME' conv (im2col) path.
    K3 = 3
    conv_w3 = jax.random.uniform(k_w3, (Fi, H, K3), jnp.float32, -bound1, bound1)
    out3 = transformer_ffn_layer(x, conv_w3, conv_b, lin_w, lin_b,
                                 kernel_size=K3, padding="SAME", act="gelu")
    out3 = jax.block_until_ready(out3)
    ref3 = _reference_ffn(x, conv_w3, conv_b, lin_w, lin_b, kernel_size=K3)
    assert jnp.allclose(out3, ref3, atol=2e-3, rtol=2e-3), "mismatch (k=3)"

    print("KERNEL_OK")
</pallas_src>

<mosaic_0001>
module attributes {stable_mosaic.version = 11 : i64} {
  func.func @_ffn_kernel(%arg0: i32, %arg1: i32, %arg2: memref<16x128xbf16, #tpu.memory_space<vmem>>, %arg3: memref<128x128xbf16, #tpu.memory_space<vmem>>, %arg4: memref<1x128xf32, #tpu.memory_space<vmem>>, %arg5: memref<128x128xbf16, #tpu.memory_space<vmem>>, %arg6: memref<1x128xf32, #tpu.memory_space<vmem>>, %arg7: memref<16x128xf32, #tpu.memory_space<vmem>>, %arg8: memref<16x128xf32, #tpu.memory_space<vmem>>) attributes {dimension_semantics = [#tpu.dimension_semantics<parallel>, #tpu.dimension_semantics<arbitrary>], iteration_bounds = array<i64: 1, 1>, scalar_prefetch = 0 : i64, scratch_operands = 1 : i64, tpu.core_type = #tpu.core_type<tc>, window_params = [{transform_indices = @transform_0, window_bounds = array<i64: 16, 128>}, {pipeline_mode = #tpu.pipeline_mode<synchronous>, transform_indices = @transform_1, window_bounds = array<i64: 128, 128>}, {pipeline_mode = #tpu.pipeline_mode<synchronous>, transform_indices = @transform_2, window_bounds = array<i64: 1, 128>}, {pipeline_mode = #tpu.pipeline_mode<synchronous>, transform_indices = @transform_3, window_bounds = array<i64: 128, 128>}, {pipeline_mode = #tpu.pipeline_mode<synchronous>, transform_indices = @transform_4, window_bounds = array<i64: 1, 128>}, {transform_indices = @transform_5, window_bounds = array<i64: 16, 128>}]} {
    %c0_i32 = arith.constant 0 : i32
    %0 = arith.cmpi eq, %arg1, %c0_i32 : i32
    %1 = arith.extui %0 : i1 to i32
    %c0_i32_0 = arith.constant 0 : i32
    %2 = arith.cmpi ne, %1, %c0_i32_0 : i32
    scf.if %2 {
      %cst_20 = arith.constant 0.000000e+00 : f32
      %33 = vector.broadcast %cst_20 : f32 to vector<16x128xf32>
      %c0_21 = arith.constant 0 : index
      %c0_22 = arith.constant 0 : index
      %34 = vector.load %arg8[%c0_21, %c0_22] : memref<16x128xf32, #tpu.memory_space<vmem>>, vector<16x128xf32>
      tpu.vector_store %arg8[%c0_21, %c0_22], %33 {strides = array<i32>} : memref<16x128xf32, #tpu.memory_space<vmem>>, vector<16x128xf32>,
    } else {
    }
    %c0 = arith.constant 0 : index
    %c0_1 = arith.constant 0 : index
    %3 = vector.load %arg2[%c0, %c0_1] : memref<16x128xbf16, #tpu.memory_space<vmem>>, vector<16x128xbf16>
    %c0_2 = arith.constant 0 : index
    %c0_3 = arith.constant 0 : index
    %4 = vector.load %arg3[%c0_2, %c0_3] : memref<128x128xbf16, #tpu.memory_space<vmem>>, vector<128x128xbf16>
    %cst = arith.constant dense<0.000000e+00> : vector<16x128xf32>
    %5 = tpu.matmul %3, %4, %cst {dimension_numbers = #tpu.dot_dimension_numbers<[1], [0], [0], [1], [0, 0, 1, 1], [], []>} : vector<16x128xbf16>, vector<128x128xbf16>, vector<16x128xf32> -> vector<16x128xf32>
    %c0_4 = arith.constant 0 : index
    %c0_5 = arith.constant 0 : index
    %6 = vector.load %arg4[%c0_4, %c0_5] : memref<1x128xf32, #tpu.memory_space<vmem>>, vector<1x128xf32>
    %7 = vector.broadcast %6 : vector<1x128xf32> to vector<16x128xf32>
    %8 = arith.addf %5, %7 : vector<16x128xf32>
    %cst_6 = arith.constant 1.000000e+00 : f32
    %9 = vector.broadcast %cst_6 : f32 to vector<16x128xf32>
    %10 = arith.mulf %8, %9 : vector<16x128xf32>
    %cst_7 = arith.constant 5.000000e-01 : f32
    %11 = vector.broadcast %cst_7 : f32 to vector<16x128xf32>
    %12 = arith.mulf %11, %10 : vector<16x128xf32>
    %cst_8 = arith.constant 4.471500e-02 : f32
    %13 = vector.broadcast %cst_8 : f32 to vector<16x128xf32>
    %14 = arith.mulf %13, %10 : vector<16x128xf32>
    %15 = arith.mulf %14, %10 : vector<16x128xf32>
    %16 = arith.mulf %15, %10 : vector<16x128xf32>
    %17 = arith.addf %10, %16 : vector<16x128xf32>
    %cst_9 = arith.constant 0.797884583 : f32
    %18 = vector.broadcast %cst_9 : f32 to vector<16x128xf32>
    %19 = arith.mulf %18, %17 : vector<16x128xf32>
    %20 = math.tanh %19 : vector<16x128xf32>
    %cst_10 = arith.constant 1.000000e+00 : f32
    %21 = vector.broadcast %cst_10 : f32 to vector<16x128xf32>
    %22 = arith.addf %21, %20 : vector<16x128xf32>
    %23 = arith.mulf %12, %22 : vector<16x128xf32>
    %c0_11 = arith.constant 0 : index
    %c0_12 = arith.constant 0 : index
    %24 = vector.load %arg8[%c0_11, %c0_12] : memref<16x128xf32, #tpu.memory_space<vmem>>, vector<16x128xf32>
    %25 = arith.truncf %23 : vector<16x128xf32> to vector<16x128xbf16>
    %c0_13 = arith.constant 0 : index
    %c0_14 = arith.constant 0 : index
    %26 = vector.load %arg5[%c0_13, %c0_14] : memref<128x128xbf16, #tpu.memory_space<vmem>>, vector<128x128xbf16>
    %cst_15 = arith.constant dense<0.000000e+00> : vector<16x128xf32>
    %27 = tpu.matmul %25, %26, %cst_15 {dimension_numbers = #tpu.dot_dimension_numbers<[1], [0], [0], [1], [0, 0, 1, 1], [], []>} : vector<16x128xbf16>, vector<128x128xbf16>, vector<16x128xf32> -> vector<16x128xf32>
    %28 = arith.addf %24, %27 : vector<16x128xf32>
    %c0_16 = arith.constant 0 : index
    %c0_17 = arith.constant 0 : index
    %29 = vector.load %arg8[%c0_16, %c0_17] : memref<16x128xf32, #tpu.memory_space<vmem>>, vector<16x128xf32>
    tpu.vector_store %arg8[%c0_16, %c0_17], %28 {strides = array<i32>} : memref<16x128xf32, #tpu.memory_space<vmem>>, vector<16x128xf32>,
    %c0_i32_18 = arith.constant 0 : i32
    %30 = arith.cmpi eq, %arg1, %c0_i32_18 : i32
    %31 = arith.extui %30 : i1 to i32
    %c0_i32_19 = arith.constant 0 : i32
    %32 = arith.cmpi ne, %31, %c0_i32_19 : i32
    scf.if %32 {
      %c0_20 = arith.constant 0 : index
      %c0_21 = arith.constant 0 : index
      %33 = vector.load %arg8[%c0_20, %c0_21] : memref<16x128xf32, #tpu.memory_space<vmem>>, vector<16x128xf32>
      %c0_22 = arith.constant 0 : index
      %c0_23 = arith.constant 0 : index
      %34 = vector.load %arg6[%c0_22, %c0_23] : memref<1x128xf32, #tpu.memory_space<vmem>>, vector<1x128xf32>
      %35 = vector.broadcast %34 : vector<1x128xf32> to vector<16x128xf32>
      %36 = arith.addf %33, %35 : vector<16x128xf32>
      %c0_24 = arith.constant 0 : index
      %c0_25 = arith.constant 0 : index
      %37 = vector.load %arg7[%c0_24, %c0_25] : memref<16x128xf32, #tpu.memory_space<vmem>>, vector<16x128xf32>
      tpu.vector_store %arg7[%c0_24, %c0_25], %36 {strides = array<i32>} : memref<16x128xf32, #tpu.memory_space<vmem>>, vector<16x128xf32>,
    } else {
    }
    return
  }
  func.func @transform_0(%arg0: i32, %arg1: i32) -> (i32, i32) {
    %c0_i32 = arith.constant 0 : i32
    %c0_i32_0 = arith.constant 0 : i32
    return %arg0, %c0_i32 : i32, i32
  }
  func.func @transform_1(%arg0: i32, %arg1: i32) -> (i32, i32) {
    %c0_i32 = arith.constant 0 : i32
    %c0_i32_0 = arith.constant 0 : i32
    return %c0_i32, %arg1 : i32, i32
  }
  func.func @transform_2(%arg0: i32, %arg1: i32) -> (i32, i32) {
    %c0_i32 = arith.constant 0 : i32
    %c0_i32_0 = arith.constant 0 : i32
    return %c0_i32, %arg1 : i32, i32
  }
  func.func @transform_3(%arg0: i32, %arg1: i32) -> (i32, i32) {
    %c0_i32 = arith.constant 0 : i32
    %c0_i32_0 = arith.constant 0 : i32
    return %arg1, %c0_i32 : i32, i32
  }
  func.func @transform_4(%arg0: i32, %arg1: i32) -> (i32, i32) {
    %c0_i32 = arith.constant 0 : i32
    %c0_i32_0 = arith.constant 0 : i32
    %c0_i32_1 = arith.constant 0 : i32
    return %c0_i32, %c0_i32_0 : i32, i32
  }
  func.func @transform_5(%arg0: i32, %arg1: i32) -> (i32, i32) {
    %c0_i32 = arith.constant 0 : i32
    %c0_i32_0 = arith.constant 0 : i32
    return %arg0, %c0_i32 : i32, i32
  }
}

</mosaic_0001>

<bundles_post_ra>
// kernel: tpu_custom_call.1
= control target key start
LH: loop header
LB: loop body
LE: loop exit
PB: predicated region body
PF: predicated region fallthrough
CT: control target
= control target key end

     0   :  { %10 = vsyncpa [#allocation4], 0  ;;  %s557_s0 = inlined_call_operand.hbm [shape: bf16[16,128], index: 0, kind: input, shape index: {}]   ;;  %s558_s1 = inlined_call_operand.hbm [shape: bf16[128,128], index: 1, kind: input, shape index: {}]   ;;  %s559_s2 = inlined_call_operand.vmem [shape: f32[1,128], index: 2, kind: input, shape index: {}]   ;;  %s560_s3 = inlined_call_operand.hbm [shape: bf16[128,128], index: 3, kind: input, shape index: {}]   ;;  %s561_s4 = inlined_call_operand.vmem [shape: f32[1,128], index: 4, kind: input, shape index: {}]   ;;  %s562_s5 = inlined_call_operand.hbm [shape: f32[16,128], index: 5, kind: output, shape index: {}]  }
   0x1   :  { %11 = vsyncpa [#allocation7], 0 }
   0x2   :  { %12 = vsyncpa [#allocation5], 0  ;;  %s30_s20 = sshll.u32 %s558_s1, 4  ;;  %s501_s21 = smov [#allocation6]   ;;  %s31_s20 = int_to_ptr.hbm [resolvable:$true] %s30_s20 }
   0x3   :  { %s32_s22 = sshll.u32 %s501_s21, 4  ;;  %s17_s25 = sshll.u32 %s557_s0, 4  ;;  %s33_s22 = int_to_ptr.vmem [resolvable:$true] %s32_s22  ;;  %s18_s25 = int_to_ptr.hbm [resolvable:$true] %s17_s25 }
   0x4   :  { %s502_s26 = smov 64   ;;  %s503_s27 = smov 4  }
   0x5   :  { %38 = dma.hbm_to_vmem [thread:$0]  %s31_s20, 1024, %s33_s22, [#allocation7], %s502_s26, %s502_s26, %s503_s27  }
   0x6   :  { %s504_s28 = smov [#allocation3]   ;;  %s45_s7 = sshll.u32 %s560_s3, 4  ;;  %s46_s7 = int_to_ptr.hbm [resolvable:$true] %s45_s7 }
   0x7   :  { %s19_s29 = sshll.u32 %s504_s28, 4  ;;  %s505_s1 = smov [#allocation8]   ;;  %s20_s29 = int_to_ptr.vmem [resolvable:$true] %s19_s29 }
   0x8   :  { %25 = dma.hbm_to_vmem [thread:$0]  %s18_s25, 128, %s20_s29, [#allocation4], %s502_s26, %s502_s26, %s503_s27  }
   0x9   :  { %s47_s8 = sshll.u32 %s505_s1, 4  ;;  %s48_s8 = int_to_ptr.vmem [resolvable:$true] %s47_s8 }
   0xa   :  { %53 = dma.hbm_to_vmem [thread:$0]  %s46_s7, 1024, %s48_s8, [#allocation7], %s502_s26, %s502_s26, %s503_s27  }
   0xb   :  { %495 = dma.done.wait [#allocation4], 128  }
   0xc   :  { %496 = vsyncadd [#allocation4], 4294967168 }
   0xd   :  { %497 = dma.done.wait [#allocation7], 2048  }
   0xe   :  { %498 = vsyncadd [#allocation7], 4294965248  ;;  %v376_v0 = vld [vmem:[#allocation6 + $0x38] sm:$0xff]  ;;  %v375_v1 = vld [vmem:[#allocation6 + $0x30] sm:$0xff]  ;;  %s506_s10 = smov [#allocation9]   ;;  %s286_s14 = sshll.u32 %s562_s5, 4  ;;  %s287_s14 = int_to_ptr.hbm [resolvable:$true] %s286_s14 }
   0xf   :  { %150 = vmatpush.bf16.msra.mxu0 %v376_v0  ;;  %v374_v2 = vld [vmem:[#allocation6 + $0x28] sm:$0xff]  ;;  %v373_v3 = vld [vmem:[#allocation6 + $0x20] sm:$0xff]  ;;  %v372_v4 = vld [vmem:[#allocation6 + $0x18] sm:$0xff]  ;;  %s284_s11 = sshll.u32 %s506_s10, 4  ;;  %s507_s15 = smov 128   ;;  %s285_s11 = int_to_ptr.vmem [resolvable:$true] %s284_s11 }
  0x10   :  { %v371_v5 = vld [vmem:[#allocation6 + $0x10] sm:$0xff]  ;;  %v370_v6 = vld [vmem:[#allocation6 + $0x8] sm:$0xff]  ;;  %v369_v7 = vld [vmem:[#allocation6] sm:$0xff]  ;;  %s508_s16 = smov 8  }
  0x11   :  { %v368_v8 = vld [vmem:[#allocation3] sm:$0xff]  ;;  %v383_v10 = vld [vmem:[#allocation8 + $0x30] sm:$0xff]  ;;  %v382_v11 = vld [vmem:[#allocation8 + $0x28] sm:$0xff] }
  0x12   :  { %v384_v9 = vld [vmem:[#allocation8 + $0x38] sm:$0xff]  ;;  %v381_v12 = vld [vmem:[#allocation8 + $0x20] sm:$0xff]  ;;  %v379_v14 = vld [vmem:[#allocation8 + $0x10] sm:$0xff] }
  0x13   :  { %151 = vmatpush.bf16.msra.mxu0 %v375_v1  ;;  %249 = vmatpush.bf16.msra.mxu1 %v384_v9  ;;  %v380_v13 = vld [vmem:[#allocation8 + $0x18] sm:$0xff]  ;;  %v378_v15 = vld [vmem:[#allocation8 + $0x8] sm:$0xff]  ;;  %v377_v16 = vld [vmem:[#allocation8] sm:$0xff] }
  0x14   :  { %v393_v17 = vld [vmem:[%s559_s2] ss:$0 sm:$0xff] }
  0x15   :  { %v394_v41 = vld [vmem:[%s561_s4] ss:$0 sm:$0xff] }
  0x17   :  { %152 = vmatpush.bf16.msra.mxu0 %v374_v2  ;;  %250 = vmatpush.bf16.msra.mxu1 %v383_v10 }
  0x1b   :  { %153 = vmatpush.bf16.msra.mxu0 %v373_v3  ;;  %251 = vmatpush.bf16.msra.mxu1 %v382_v11 }
  0x1f   :  { %154 = vmatpush.bf16.msra.mxu0 %v372_v4  ;;  %252 = vmatpush.bf16.msra.mxu1 %v381_v12 }
  0x23   :  { %155 = vmatpush.bf16.msra.mxu0 %v371_v5  ;;  %253 = vmatpush.bf16.msra.mxu1 %v380_v13 }
  0x27   :  { %156 = vmatpush.bf16.msra.mxu0 %v370_v6  ;;  %254 = vmatpush.bf16.msra.mxu1 %v379_v14 }
  0x2b   :  { %157 = vmatpush.bf16.msra.mxu0 %v369_v7  ;;  %255 = vmatpush.bf16.msra.mxu1 %v378_v15 }
  0x2e   :  { %158 = vmatmul.bf16.vlgmr.msra.gmra.mxu0 %v368_v8 }
  0x2f   :  { %256 = vmatpush.bf16.msra.mxu1 %v377_v16 }
  0xab   :  { %v159_v18 = vpop.f32.mrf.mxu0 }
  0xac   :  { %v160_v19 = vadd.f32 %v393_v17, %v159_v18 }
  0xae   :  { %v166_v20 = vmul.f32 0.044715, %v160_v19  ;;  %v164_v35 = vmul.f32 0.5, %v160_v19 }
  0xb0   :  { %v168_v21 = vmul.f32 %v166_v20, %v160_v19 }
  0xb2   :  { %v170_v22 = vmul.f32 %v168_v21, %v160_v19 }
  0xb3   :  { %v161_v23 = vpop.f32.mrf.mxu0 }
  0xb4   :  { %v162_v24 = vadd.f32 %v393_v17, %v161_v23  ;;  %v172_v25 = vadd.f32 %v170_v22, %v160_v19 }
  0xb6   :  { %v167_v26 = vmul.f32 0.044715, %v162_v24  ;;  %v174_v28 = vmul.f32 0.7978846, %v172_v25  ;;  %v165_v36 = vmul.f32 0.5, %v162_v24 }
  0xb8   :  { %v169_v27 = vmul.f32 %v167_v26, %v162_v24  ;;  %395 = vtanh.f32 %v174_v28 }
  0xba   :  { %v171_v29 = vmul.f32 %v169_v27, %v162_v24 }
  0xbc   :  { %v173_v30 = vadd.f32 %v171_v29, %v162_v24 }
  0xbe   :  { %v175_v31 = vmul.f32 0.7978846, %v173_v30  ;;  %v396_v32 = vpop.eup %395 }
  0xbf   :  { %v178_v33 = vadd.f32 1.0, %v396_v32 }
  0xc0   :  { %397 = vtanh.f32 %v175_v31 }
  0xc1   :  { %v180_v38 = vmul.f32 %v178_v33, %v164_v35 }
  0xc6   :  { %v398_v34 = vpop.eup %397 }
  0xc7   :  { %v179_v37 = vadd.f32 1.0, %v398_v34 }
  0xc9   :  { %v181_v39 = vmul.f32 %v179_v37, %v165_v36 }
  0xcb   :  { %v184_v40 = vpack.c.bf16 %v181_v39, %v180_v38 }
  0xcd   :  { %257 = vmatmul.bf16.vlgmr.msra.gmra.mxu1 %v184_v40 }
 0x14a   :  { %v258_v42 = vpop.f32.mrf.mxu1 }
 0x14b   :  { %v276_v43 = vadd.f32 %v394_v41, %v258_v42 }
 0x14d   :  { %278 = vst [vmem:[#allocation9] sm:$0xff] %v276_v43 }
 0x152   :  { %v260_v44 = vpop.f32.mrf.mxu1 }
 0x153   :  { %v277_v45 = vadd.f32 %v394_v41, %v260_v44 }
 0x155   :  { %279 = vst [vmem:[#allocation9 + $0x8] sm:$0xff] %v277_v45 }
 0x156   :  { %292 = dma.vmem_to_hbm [thread:$0]  %s285_s11, 256, %s287_s14, [#allocation5], %s507_s15, %s507_s15, %s508_s16  }
 0x157   :  { %499 = dma.done.wait [#allocation5], 256  }
 0x158   :  { %500 = vsyncadd [#allocation5], 4294967040 }
 0x159   :  { %297 = vsyncpa [#allocation4], 1 }
 0x15a   :  { %298 = vsyncpa [#allocation7], 1 }
 0x15b   :  { %299 = vsyncpa [#allocation5], 1 }

</bundles_post_ra>
